<compile_context>
chip_gen: v7x
topology: tpu7x:2x2x1
jax: 0.10.0
libtpu: 0.0.40
codegen_flags: <defaults>
</compile_context>

<pallas_src>
import functools

import numpy as np
import jax
import jax.numpy as jnp
from jax.experimental import pallas as pl
from jax.experimental.pallas import tpu as pltpu

_LANES = 128                    # lane width / MXU-friendly padding target
_SUBLANES = 8                   # sublane height
_MAX_SINGLE_BLOCK_ROWS = 4096   # single-block (no-pipeline) path on 1-TC chips
_MAX_BT = 2048                  # batch tile cap when the batch is tiled


def _round_up(n, m):
    return ((n + m - 1) // m) * m


def _has_two_tensorcores():
    """v7x has 2 TensorCores per chip; v5e/v6e have 1."""
    try:
        kind = jax.devices()[0].device_kind.lower()
    except Exception:
        return False
    return "v7" in kind


_TWO_TC = _has_two_tensorcores()


def policy_mlp_kernel(x_ref, w1_ref, b1_ref, w2_ref, b2_ref, mu_ref):
    """Fused fc1 -> ReLU -> fc2_mean on one batch tile (everything in VMEM).

    The matmuls run on the 128-lane padded tiles; only the first
    `action_space` lanes of mu are stored (lean HBM writeback).
    """
    # fc1: [Bt, S] @ [S, Hp] + [1, Hp]
    h = jnp.dot(x_ref[...], w1_ref[...], preferred_element_type=jnp.float32)
    h = jnp.maximum(h + b1_ref[...], 0.0)
    # fc2_mean: [Bt, Hp] @ [Hp, Ap] + [1, Ap]
    mu_full = jnp.dot(h, w2_ref[...], preferred_element_type=jnp.float32) + b2_ref[...]
    # Store only the real action lanes (out block last dim == action_space).
    mu_ref[...] = mu_full[:, : mu_ref.shape[-1]]


def prepare_policy_params(params):
    """One-time prep: transpose, reshape and zero-pad the Linear params.

    params: dict with fc1_w [H,S], fc1_b [H], fc2_w [A,H], fc2_b [A]
    returns dict of padded, kernel-layout arrays:
      w1t [S, Hp], b1 [1, Hp], w2t [Hp, Ap], b2 [1, Ap]   (Hp = Ap = 128)
    """
    fc1_w = jnp.asarray(params["fc1_w"], jnp.float32)   # [H, S]
    fc1_b = jnp.asarray(params["fc1_b"], jnp.float32)   # [H]
    fc2_w = jnp.asarray(params["fc2_w"], jnp.float32)   # [A, H]
    fc2_b = jnp.asarray(params["fc2_b"], jnp.float32)   # [A]

    hidden, state_space = fc1_w.shape
    action_space = fc2_w.shape[0]
    hp = _round_up(hidden, _LANES)
    ap = _round_up(action_space, _LANES)

    # Zero padding is exact: zero w1t columns + zero b1 -> relu(0)=0 hidden
    # lanes; zero w2t rows contribute nothing to mu.
    w1t = jnp.zeros((state_space, hp), jnp.float32).at[:, :hidden].set(fc1_w.T)
    b1 = jnp.zeros((1, hp), jnp.float32).at[0, :hidden].set(fc1_b)
    w2t = jnp.zeros((hp, ap), jnp.float32).at[:hidden, :action_space].set(fc2_w.T)
    b2 = jnp.zeros((1, ap), jnp.float32).at[0, :action_space].set(fc2_b)
    return {"w1t": w1t, "b1": b1, "w2t": w2t, "b2": b2}


@functools.partial(jax.jit, static_argnames=("action_space", "sigma_type"))
def policy_forward(x, prepared, ep, *, action_space, sigma_type=None):
    """JAX/Pallas forward reproducing Policy.forward.

    Args:
      x:            [batch, state_space] float32
      prepared:     output of prepare_policy_params
      ep:           episode number (python scalar or jnp scalar; may be traced)
      action_space: static int, number of actions (unpadded)
      sigma_type:   None / 'expon' / 'learn' (matching the PyTorch module)

    Returns:
      (mu [batch, action_space], sigma [1])  -- the Normal(mu, sigma) params.
    """
    w1t, b1, w2t, b2 = prepared["w1t"], prepared["b1"], prepared["w2t"], prepared["b2"]
    batch, state_space = x.shape
    hp, ap = w2t.shape

    # ---- batch tiling strategy (trace-time Python; shapes are static) ----
    b8 = _round_up(batch, _SUBLANES)
    if _TWO_TC and b8 > _SUBLANES:
        # v7x: guarantee >= 2 grid steps so both TensorCores get work.
        bt = min(_MAX_BT, _round_up(-(-b8 // 2), _SUBLANES))
        b_pad = _round_up(batch, bt)
        semantics = (pltpu.CORE_PARALLEL,)
    elif batch <= _MAX_SINGLE_BLOCK_ROWS:
        # v5e/v6e (single TC): one block, no pipeline, no batch padding at all
        # (block dims equal to the full array dims are exempt from (8,128)).
        bt = batch
        b_pad = batch
        semantics = ("arbitrary",)
    else:
        # Very large batch on a single-TC chip: tile at the max block size.
        bt = _MAX_BT
        b_pad = _round_up(batch, bt)
        semantics = ("parallel",)

    if b_pad != batch:
        x = jnp.pad(x, ((0, b_pad - batch), (0, 0)))
    grid = (b_pad // bt,)

    flops = 2 * b_pad * (state_space * hp + hp * ap)
    bytes_accessed = 4 * (
        b_pad * state_space              # x in
        + state_space * hp + hp          # fc1 params
        + hp * ap + ap                   # fc2 params
        + b_pad * action_space           # slim mu out (not the padded ap)
    )

    # Tight VMEM budget: double-buffered x/mu tiles + h / padded-mu temporaries
    # + (conservatively double-buffered) resident weights, with 2x margin.
    vmem_bytes = 4 * (
        2 * bt * state_space
        + 2 * bt * action_space
        + 2 * bt * hp
        + 2 * (state_space * hp + hp + hp * ap + ap)
    )
    vmem_limit = max(8 * 1024 * 1024, 2 * vmem_bytes)

    mu = pl.pallas_call(
        policy_mlp_kernel,
        out_shape=jax.ShapeDtypeStruct((b_pad, action_space), jnp.float32),
        grid=grid,
        in_specs=[
            pl.BlockSpec((bt, state_space), lambda i: (i, 0)),   # x tile
            pl.BlockSpec((state_space, hp), lambda i: (0, 0)),   # w1t (resident)
            pl.BlockSpec((1, hp), lambda i: (0, 0)),             # b1
            pl.BlockSpec((hp, ap), lambda i: (0, 0)),            # w2t
            pl.BlockSpec((1, ap), lambda i: (0, 0)),             # b2
        ],
        out_specs=pl.BlockSpec((bt, action_space), lambda i: (i, 0)),  # slim mu
        compiler_params=pltpu.CompilerParams(
            dimension_semantics=semantics,
            vmem_limit_bytes=vmem_limit,
        ),
        cost_estimate=pl.CostEstimate(
            flops=flops, transcendentals=0, bytes_accessed=bytes_accessed
        ),
    )(x, w1t, b1, w2t, b2)

    if b_pad != batch:
        mu = mu[:batch]

    # sigma: scalar glue matching Policy.__init__ / forward.
    # NOTE: in the PyTorch spec the 'learn' elif is unreachable (first branch
    # catches it), so 'learn' also yields a constant sqrt(10) tensor.
    # TODO(synk): a genuinely learnable sigma parameter has no meaning here;
    # we reproduce the spec as written (constant sqrt(10) for 'learn').
    if sigma_type == "expon" or sigma_type == "learn":
        base_sigma = jnp.array([np.sqrt(10.0)], dtype=jnp.float32)
    else:  # sigma_type is None
        base_sigma = jnp.array([np.sqrt(5.0)], dtype=jnp.float32)

    if sigma_type == "expon":
        sigma = base_sigma * jnp.sqrt(jnp.exp(-5e-4 * jnp.asarray(ep, jnp.float32)))
    else:
        sigma = base_sigma

    # TODO(synk): torch.distributions.Normal object itself has no Pallas
    # equivalent; we return its (mu, sigma) parameters instead.
    return mu, sigma


def init_policy_params(key, state_space, action_space, hidden=64):
    """Deterministic init matching Policy.init_weights:
    weights ~ Normal(0, 1), biases = 0."""
    k1, k2 = jax.random.split(key)
    return {
        "fc1_w": jax.random.normal(k1, (hidden, state_space), dtype=jnp.float32),
        "fc1_b": jnp.zeros((hidden,), dtype=jnp.float32),
        "fc2_w": jax.random.normal(k2, (action_space, hidden), dtype=jnp.float32),
        "fc2_b": jnp.zeros((action_space,), dtype=jnp.float32),
    }


if __name__ == "__main__":
    key = jax.random.PRNGKey(0)
    kx, kp = jax.random.split(key)

    batch = 2
    state_space = 4       # e.g. CartPole-like observation
    action_space = 2
    hidden = 64           # fixed by the module

    params = init_policy_params(kp, state_space, action_space, hidden)
    prepared = prepare_policy_params(params)           # one-time layout prep
    x = jax.random.normal(kx, (batch, state_space), dtype=jnp.float32)

    ep = 100  # episode number used by the 'expon' sigma schedule

    # sigma_type=None path
    mu, sigma = policy_forward(
        x, prepared, ep, action_space=action_space, sigma_type=None
    )
    mu = jax.block_until_ready(mu)
    sigma = jax.block_until_ready(sigma)

    # 'expon' path (exercise the sigma schedule under jit as well)
    mu_e, sigma_e = policy_forward(
        x, prepared, ep, action_space=action_space, sigma_type="expon"
    )
    mu_e = jax.block_until_ready(mu_e)
    sigma_e = jax.block_until_ready(sigma_e)

    # reference check in plain JAX
    h_ref = jnp.maximum(x @ params["fc1_w"].T + params["fc1_b"], 0.0)
    mu_ref = h_ref @ params["fc2_w"].T + params["fc2_b"]
    assert mu.shape == (batch, action_space)
    assert sigma.shape == (1,)
    np.testing.assert_allclose(np.asarray(mu), np.asarray(mu_ref),
                               rtol=1e-5, atol=1e-5)
    np.testing.assert_allclose(np.asarray(mu_e), np.asarray(mu_ref),
                               rtol=1e-5, atol=1e-5)
    np.testing.assert_allclose(
        np.asarray(sigma), np.array([np.sqrt(5.0)], np.float32), rtol=1e-6)
    np.testing.assert_allclose(
        np.asarray(sigma_e),
        np.array([np.sqrt(10.0) * np.sqrt(np.e ** (-5e-4 * ep))], np.float32),
        rtol=1e-5)

    # larger batch: single block on v5e/v6e; >=2 CORE_PARALLEL steps on v7x
    xb = jax.random.normal(kx, (1000, state_space), dtype=jnp.float32)
    mu_b, _ = policy_forward(
        xb, prepared, ep, action_space=action_space, sigma_type=None
    )
    mu_b = jax.block_until_ready(mu_b)
    hb = jnp.maximum(xb @ params["fc1_w"].T + params["fc1_b"], 0.0)
    mu_b_ref = hb @ params["fc2_w"].T + params["fc2_b"]
    np.testing.assert_allclose(np.asarray(mu_b), np.asarray(mu_b_ref),
                               rtol=1e-4, atol=1e-4)

    print("KERNEL_OK")
</pallas_src>

<mosaic_0001>
module attributes {stable_mosaic.version = 11 : i64} {
  func.func @policy_mlp_kernel(%arg0: i32, %arg1: memref<2x4xf32, #tpu.memory_space<vmem>>, %arg2: memref<4x128xf32, #tpu.memory_space<vmem>>, %arg3: memref<1x128xf32, #tpu.memory_space<vmem>>, %arg4: memref<128x128xf32, #tpu.memory_space<vmem>>, %arg5: memref<1x128xf32, #tpu.memory_space<vmem>>, %arg6: memref<2x2xf32, #tpu.memory_space<vmem>>) attributes {dimension_semantics = [#tpu.dimension_semantics<arbitrary>], iteration_bounds = array<i64: 1>, scalar_prefetch = 0 : i64, scratch_operands = 0 : i64, tpu.core_type = #tpu.core_type<tc>, window_params = [{transform_indices = @transform_0, window_bounds = array<i64: 2, 4>}, {pipeline_mode = #tpu.pipeline_mode<synchronous>, transform_indices = @transform_1, window_bounds = array<i64: 4, 128>}, {pipeline_mode = #tpu.pipeline_mode<synchronous>, transform_indices = @transform_2, window_bounds = array<i64: 1, 128>}, {pipeline_mode = #tpu.pipeline_mode<synchronous>, transform_indices = @transform_3, window_bounds = array<i64: 128, 128>}, {pipeline_mode = #tpu.pipeline_mode<synchronous>, transform_indices = @transform_4, window_bounds = array<i64: 1, 128>}, {transform_indices = @transform_5, window_bounds = array<i64: 2, 2>}]} {
    %c0 = arith.constant 0 : index
    %c0_0 = arith.constant 0 : index
    %0 = vector.load %arg1[%c0, %c0_0] : memref<2x4xf32, #tpu.memory_space<vmem>>, vector<2x4xf32>
    %c0_1 = arith.constant 0 : index
    %c0_2 = arith.constant 0 : index
    %1 = vector.load %arg2[%c0_1, %c0_2] : memref<4x128xf32, #tpu.memory_space<vmem>>, vector<4x128xf32>
    %cst = arith.constant dense<0.000000e+00> : vector<2x128xf32>
    %2 = tpu.matmul %0, %1, %cst {dimension_numbers = #tpu.dot_dimension_numbers<[1], [0], [0], [1], [0, 0, 1, 1], [], []>} : vector<2x4xf32>, vector<4x128xf32>, vector<2x128xf32> -> vector<2x128xf32>
    %c0_3 = arith.constant 0 : index
    %c0_4 = arith.constant 0 : index
    %3 = vector.load %arg3[%c0_3, %c0_4] : memref<1x128xf32, #tpu.memory_space<vmem>>, vector<1x128xf32>
    %4 = vector.broadcast %3 : vector<1x128xf32> to vector<2x128xf32>
    %5 = arith.addf %2, %4 : vector<2x128xf32>
    %cst_5 = arith.constant 0.000000e+00 : f32
    %6 = vector.broadcast %cst_5 : f32 to vector<2x128xf32>
    %7 = arith.maximumf %5, %6 : vector<2x128xf32>
    %c0_6 = arith.constant 0 : index
    %c0_7 = arith.constant 0 : index
    %8 = vector.load %arg4[%c0_6, %c0_7] : memref<128x128xf32, #tpu.memory_space<vmem>>, vector<128x128xf32>
    %cst_8 = arith.constant dense<0.000000e+00> : vector<2x128xf32>
    %9 = tpu.matmul %7, %8, %cst_8 {dimension_numbers = #tpu.dot_dimension_numbers<[1], [0], [0], [1], [0, 0, 1, 1], [], []>} : vector<2x128xf32>, vector<128x128xf32>, vector<2x128xf32> -> vector<2x128xf32>
    %c0_9 = arith.constant 0 : index
    %c0_10 = arith.constant 0 : index
    %10 = vector.load %arg5[%c0_9, %c0_10] : memref<1x128xf32, #tpu.memory_space<vmem>>, vector<1x128xf32>
    %11 = vector.broadcast %10 : vector<1x128xf32> to vector<2x128xf32>
    %12 = arith.addf %9, %11 : vector<2x128xf32>
    %13 = vector.extract_strided_slice %12 {offsets = [0, 0], sizes = [2, 2], strides = [1, 1]} : vector<2x128xf32> to vector<2x2xf32>
    %c0_11 = arith.constant 0 : index
    %c0_12 = arith.constant 0 : index
    %14 = vector.load %arg6[%c0_11, %c0_12] : memref<2x2xf32, #tpu.memory_space<vmem>>, vector<2x2xf32>
    tpu.vector_store %arg6[%c0_11, %c0_12], %13 {strides = array<i32>} : memref<2x2xf32, #tpu.memory_space<vmem>>, vector<2x2xf32>,
    return
  }
  func.func @transform_0(%arg0: i32) -> (i32, i32) {
    %c0_i32 = arith.constant 0 : i32
    %c0_i32_0 = arith.constant 0 : i32
    return %arg0, %c0_i32 : i32, i32
  }
  func.func @transform_1(%arg0: i32) -> (i32, i32) {
    %c0_i32 = arith.constant 0 : i32
    %c0_i32_0 = arith.constant 0 : i32
    %c0_i32_1 = arith.constant 0 : i32
    return %c0_i32, %c0_i32_0 : i32, i32
  }
  func.func @transform_2(%arg0: i32) -> (i32, i32) {
    %c0_i32 = arith.constant 0 : i32
    %c0_i32_0 = arith.constant 0 : i32
    %c0_i32_1 = arith.constant 0 : i32
    return %c0_i32, %c0_i32_0 : i32, i32
  }
  func.func @transform_3(%arg0: i32) -> (i32, i32) {
    %c0_i32 = arith.constant 0 : i32
    %c0_i32_0 = arith.constant 0 : i32
    %c0_i32_1 = arith.constant 0 : i32
    return %c0_i32, %c0_i32_0 : i32, i32
  }
  func.func @transform_4(%arg0: i32) -> (i32, i32) {
    %c0_i32 = arith.constant 0 : i32
    %c0_i32_0 = arith.constant 0 : i32
    %c0_i32_1 = arith.constant 0 : i32
    return %c0_i32, %c0_i32_0 : i32, i32
  }
  func.func @transform_5(%arg0: i32) -> (i32, i32) {
    %c0_i32 = arith.constant 0 : i32
    %c0_i32_0 = arith.constant 0 : i32
    return %arg0, %c0_i32 : i32, i32
  }
}

</mosaic_0001>

<bundles_post_ra>
// kernel: policy_forward.1
= control target key start
LH: loop header
LB: loop body
LE: loop exit
PB: predicated region body
PF: predicated region fallthrough
CT: control target
= control target key end

     0   :  { %10 = vsyncpa [#allocation3], 0  ;;  %s503_s0 = inlined_call_operand.hbm [shape: f32[2,4], index: 0, kind: input, shape index: {}]   ;;  %s504_s1 = inlined_call_operand.vmem [shape: f32[4,128], index: 1, kind: input, shape index: {}]   ;;  %s505_s2 = inlined_call_operand.vmem [shape: f32[1,128], index: 2, kind: input, shape index: {}]   ;;  %s506_s3 = inlined_call_operand.hbm [shape: f32[128,128], index: 3, kind: input, shape index: {}]   ;;  %s507_s4 = inlined_call_operand.vmem [shape: f32[1,128], index: 4, kind: input, shape index: {}]   ;;  %s508_s5 = inlined_call_operand.hbm [shape: f32[2,2], index: 5, kind: output, shape index: {}]  }
   0x1   :  { %11 = vsyncpa [#allocation6], 0 }
   0x2   :  { %12 = vsyncpa [#allocation4], 0  ;;  %s413_s18 = smov [#allocation2]   ;;  %s414_s20 = smov [#allocation5]  }
   0x3   :  { %s19_s19 = sshll.u32 %s413_s18, 4  ;;  %s32_s21 = sshll.u32 %s414_s20, 4  ;;  %s20_s19 = int_to_ptr.vmem [resolvable:$true] %s19_s19  ;;  %s451_s21 = int_to_ptr.vmem [resolvable:$true] %s32_s21 }
   0x4   :  { %s341_s24 = scalar_lea.hbm %s503_s0, 32 }
   0x5   :  { %p342_p0 = scmp.ne.s32.totalorder %s503_s0, %s341_s24  ;;  %p345_p1 = scmp.lt.u32.totalorder %s341_s24, %s503_s0 }
   0x7   :  { %p347_p2 = pnand %p345_p1, %p342_p0 }
   0x9   :  { %350 = shalt.err (!%p347_p2)
}
   0xa   :  { %s351_s29 = scalar_lea.vmem %s20_s19, 32  ;;  %p356_p4 = scmp.lt.s32.totalorder %s20_s19, %s20_s19 }
   0xb   :  { %p352_p3 = scmp.ne.s32.totalorder %s20_s19, %s351_s29  ;;  %p357_p5 = scmp.lt.s32.totalorder %s351_s29, %s351_s29 }
   0xd   :  { %p358_p6 = por %p357_p5, %p356_p4 }
   0xf   :  { %p359_p7 = pnand %p358_p6, %p352_p3 }
  0x11   :  { %362 = shalt.err (!%p359_p7)
}
  0x12   :  { %22 = dma.hbm_to_vmem [thread:$0]  %s503_s0, 32, %s20_s19, [#allocation3]  }
  0x13   :  { %s363_s9 = scalar_lea.hbm %s506_s3, 2048 }
  0x14   :  { %p364_p8 = scmp.ne.s32.totalorder %s506_s3, %s363_s9  ;;  %p367_p9 = scmp.lt.u32.totalorder %s363_s9, %s506_s3 }
  0x16   :  { %p369_p10 = pnand %p367_p9, %p364_p8 }
  0x18   :  { %372 = shalt.err (!%p369_p10)
}
  0x19   :  { %s373_s14 = scalar_lea.vmem %s451_s21, 2048  ;;  %p378_p12 = scmp.lt.s32.totalorder %s451_s21, %s451_s21 }
  0x1a   :  { %p374_p11 = scmp.ne.s32.totalorder %s451_s21, %s373_s14  ;;  %p379_p13 = scmp.lt.s32.totalorder %s373_s14, %s373_s14 }
  0x1c   :  { %p380_p0 = por %p379_p13, %p378_p12 }
  0x1e   :  { %p381_p1 = pnand %p380_p0, %p374_p11 }
  0x20   :  { %384 = shalt.err (!%p381_p1)
}
  0x21   :  { %s415_s0 = smov 128   ;;  %s416_s15 = smov 8  }
  0x22   :  { %38 = dma.hbm_to_vmem [thread:$0]  %s506_s3, 2048, %s451_s21, [#allocation6], %s415_s0, %s415_s0, %s416_s15  }
  0x23   :  { %407 = dma.done.wait [#allocation3], 32  }
  0x24   :  { %408 = vsyncadd [#allocation3], 4294967264 }
  0x25   :  { %409 = dma.done.wait [#allocation6], 2048  }
  0x26   :  { %410 = vsyncadd [#allocation6], 4294965248  ;;  %v417_v0 = vmov 0.0   ;;  %vm418_vm0 = vmmov 0   ;;  %v419_v1 = vmov 0.0|0.0   ;;  %vm60_vm1 = vcmask 1043456  }
  0x27   :  { %269 = vmatprep.subr.mxu0 %v417_v0  ;;  %271 = vmatprep.mubr.msk.f32.mxu0 %vm418_vm0, %v417_v0  ;;  %vm56_vm2 = vcmask 31744   ;;  %v48_v2 = vld [vmem:[%s504_s1] sm:$0xf]  ;;  %v136_v5 = vld [vmem:[#allocation5 + $0x8] sm:$0xff]  ;;  %v137_v6 = vld [vmem:[#allocation5 + $0x10] sm:$0xff]  ;;  %s420_s22 = smov [#allocation7]  }
  0x28   :  { %309 = vmatprep.subr.bf16.mxu1 %v419_v1  ;;  %306 = vmatprep.mubr.msk.f32.mxu1 %vm418_vm0, %v417_v0  ;;  %v47_v3 = vld [vmem:[#allocation2] sm:$0x3]  ;;  %v135_v4 = vld [vmem:[#allocation5] sm:$0xff]  ;;  %v140_v11 = vld [vmem:[#allocation5 + $0x28] sm:$0xff]  ;;  %s236_s23 = sshll.u32 %s420_s22, 4  ;;  %vm228_vm3 = vcmask 9216   ;;  %s237_s23 = int_to_ptr.vmem [resolvable:$true] %s236_s23 }
  0x29   :  { %270 = vmatpush3.msk.msra.mxu0 %vm60_vm1, %v48_v2  ;;  %v138_v7 = vld [vmem:[#allocation5 + $0x18] sm:$0xff]  ;;  %v310_v8 = vpack.c.bf16 %v136_v5, %v135_v4  ;;  %v139_v10 = vld [vmem:[#allocation5 + $0x20] sm:$0xff]  ;;  %v141_v13 = vld [vmem:[#allocation5 + $0x30] sm:$0xff]  ;;  %s385_s24 = scalar_lea.vmem %s237_s23, 32  ;;  %p390_p3 = scmp.lt.s32.totalorder %s237_s23, %s237_s23 }
  0x2a   :  { %272 = vmatmul.mubr.msk.f32.vlgmr.msra.gmra.mrb[0].mxu0 %vm56_vm2, %v47_v3  ;;  %v313_v9 = vpack.c.bf16 %v138_v7, %v137_v6  ;;  %v316_v12 = vpack.c.bf16 %v140_v11, %v139_v10  ;;  %v142_v14 = vld [vmem:[#allocation5 + $0x38] sm:$0xff]  ;;  %v143_v16 = vld [vmem:[#allocation5 + $0x40] sm:$0xff]  ;;  %v144_v17 = vld [vmem:[#allocation5 + $0x48] sm:$0xff]  ;;  %p386_p2 = scmp.ne.s32.totalorder %s237_s23, %s385_s24  ;;  %p391_p4 = scmp.lt.s32.totalorder %s385_s24, %s385_s24 }
  0x2b   :  { %311 = vmatpush3.bf16.msra.mxu1 %v310_v8  ;;  %v319_v15 = vpack.c.bf16 %v142_v14, %v141_v13  ;;  %v322_v18 = vpack.c.bf16 %v144_v17, %v143_v16  ;;  %v145_v19 = vld [vmem:[#allocation5 + $0x50] sm:$0xff]  ;;  %v146_v20 = vld [vmem:[#allocation5 + $0x58] sm:$0xff]  ;;  %v147_v22 = vld [vmem:[#allocation5 + $0x60] sm:$0xff] }
  0x2c   :  { %312 = vmatprep.subr.bf16.mxu1 %v419_v1  ;;  %v325_v21 = vpack.c.bf16 %v146_v20, %v145_v19  ;;  %v148_v23 = vld [vmem:[#allocation5 + $0x68] sm:$0xff]  ;;  %v149_v25 = vld [vmem:[#allocation5 + $0x70] sm:$0xff]  ;;  %v150_v26 = vld [vmem:[#allocation5 + $0x78] sm:$0xff]  ;;  %p392_p5 = por %p391_p4, %p390_p3 }
  0x2d   :  { %v328_v24 = vpack.c.bf16 %v148_v23, %v147_v22  ;;  %v331_v27 = vpack.c.bf16 %v150_v26, %v149_v25  ;;  %v246_v28 = vld [vmem:[%s505_s2] ss:$0 sm:$0xff] }
  0x2e   :  { %v249_v33 = vld [vmem:[%s507_s4] ss:$0 sm:$0xff]  ;;  %p393_p6 = pnand %p392_p5, %p386_p2 }
  0x2f   :  { %314 = vmatpush3.bf16.msra.mxu1 %v313_v9 }
  0x30   :  { %315 = vmatprep.subr.bf16.mxu1 %v419_v1 }
  0x33   :  { %317 = vmatpush3.bf16.msra.mxu1 %v316_v12 }
  0x34   :  { %318 = vmatprep.subr.bf16.mxu1 %v419_v1 }
  0x37   :  { %320 = vmatpush3.bf16.msra.mxu1 %v319_v15 }
  0x38   :  { %321 = vmatprep.subr.bf16.mxu1 %v419_v1 }
  0x3b   :  { %323 = vmatpush3.bf16.msra.mxu1 %v322_v18 }
  0x3c   :  { %324 = vmatprep.subr.bf16.mxu1 %v419_v1 }
  0x3f   :  { %326 = vmatpush3.bf16.msra.mxu1 %v325_v21 }
  0x40   :  { %327 = vmatprep.subr.bf16.mxu1 %v419_v1 }
  0x43   :  { %329 = vmatpush3.bf16.msra.mxu1 %v328_v24 }
  0x44   :  { %330 = vmatprep.subr.bf16.mxu1 %v419_v1 }
  0x47   :  { %332 = vmatpush3.bf16.msra.mxu1 %v331_v27 }
  0xfd   :  { %v130_v29 = vpop.f32.mrb[0].mxu0 }
  0xfe   :  { %v131_v30 = vadd.f32 %v246_v28, %v130_v29  ;;  %v273_v31 = vpop.f32.mrb[1].mxu0 }
 0x100   :  { %v134_v32 = vmax.f32 %v131_v30, 0.0 }
 0x102   :  { %307 = vmatmul.mubr.f32.vlgmr.msra.gmra.mrb[0].mxu1 %v134_v32 }
 0x1d5   :  { %v224_v34 = vpop.f32.mrb[0].mxu1 }
 0x1d6   :  { %v225_v35 = vadd.f32 %v249_v33, %v224_v34  ;;  %v308_v36 = vpop.f32.mrb[1].mxu1 }
 0x1d8   :  { %229 = vst.msk [vmem:[#allocation7] sm:$0x3] %vm228_vm3, %v225_v35 }
 0x1d9   :  { %396 = shalt.err (!%p393_p6)
}
 0x1da   :  { %s397_s26 = scalar_lea.hbm %s508_s5, 32 }
 0x1db   :  { %p398_p7 = scmp.ne.s32.totalorder %s508_s5, %s397_s26  ;;  %p401_p8 = scmp.lt.u32.totalorder %s397_s26, %s508_s5 }
 0x1dd   :  { %p403_p9 = pnand %p401_p8, %p398_p7 }
 0x1df   :  { %406 = shalt.err (!%p403_p9)
}
 0x1e0   :  { %239 = dma.vmem_to_hbm [thread:$0]  %s237_s23, 32, %s508_s5, [#allocation4]  }
 0x1e1   :  { %411 = dma.done.wait [#allocation4], 32  }
 0x1e2   :  { %412 = vsyncadd [#allocation4], 4294967264 }
 0x1e3   :  { %243 = vsyncpa [#allocation3], 1 }
 0x1e4   :  { %244 = vsyncpa [#allocation6], 1 }
 0x1e5   :  { %245 = vsyncpa [#allocation4], 1 }

</bundles_post_ra>
